<compile_context>
chip_gen: v7x
topology: tpu7x:2x2x1
jax: 0.10.0
libtpu: 0.0.40
codegen_flags: <defaults>
</compile_context>

<pallas_src>
import jax
import jax.numpy as jnp
from jax.experimental import pallas as pl
from jax.experimental.pallas import tpu as pltpu

INPUT_DIM = 2
HIDDEN_DIM = 64
OUTPUT_DIM = 4

# Batch-tile cap (lane axis).  Per-tile VMEM ≈ 256 B/batch element (hT) plus
# <0.5 MiB of double-buffered x/out, so 8192 is ~2.5 MiB -- far below the
# scoped VMEM limit on every TPU generation.  Sweep knob: ~2048 on v5e.
MAX_BATCH_TILE = 8192


def dqn_kernel(xT_ref, w1_ref, b1_ref, w2_ref, b2_ref, oT_ref):
    xT = xT_ref[...]        # (2, TB)   batch on lanes
    w1 = w1_ref[...]        # (64, 2)   PyTorch layout (out, in)
    b1 = b1_ref[...]        # (64, 1)
    w2 = w2_ref[...]        # (4, 64)
    b2 = b2_ref[...]        # (4, 1)

    # Layer 1: Linear(2 -> 64) + ReLU.  K=2 contraction -> VPU broadcast
    # multiply-adds (an MXU matmul would be nearly empty).
    # hT[h, b] = w1[h,0]*x[b,0] + w1[h,1]*x[b,1] + b1[h]
    hT = w1[:, 0:1] * xT[0:1, :] + w1[:, 1:2] * xT[1:2, :] + b1   # (64, TB)
    hT = jnp.maximum(hT, 0.0)

    # Layer 2: Linear(64 -> 4) on the MXU, lane-dense N = batch.
    outT = jnp.dot(w2, hT, preferred_element_type=jnp.float32) + b2  # (4, TB)
    oT_ref[...] = outT.astype(oT_ref.dtype)


def _batch_tiling(batch):
    """Pick a 128-multiple batch tile with minimal padding (not pow2)."""
    num_tiles = pl.cdiv(batch, MAX_BATCH_TILE)          # fewest tiles at the cap
    tb = max(128, pl.cdiv(pl.cdiv(batch, num_tiles), 128) * 128)
    num_tiles = pl.cdiv(batch, tb)
    return tb, num_tiles, num_tiles * tb


def dqn_forward_qT(x, w1, b1, w2, b2):
    """Lane-dense forward: x (B, 2) -> Q^T (4, B).

    Preferred entry point for downstream consumers (e.g. greedy-action
    argmax over axis 0) since it skips the output transpose entirely.
    """
    batch = x.shape[0]
    tb, num_tiles, batch_pad = _batch_tiling(batch)

    # Transpose + zero-pad the input.  Operand 0 is marked fusible so that,
    # under jit, XLA folds this into the pallas_call operand instead of
    # writing an extra (2, batch_pad) array to HBM.
    xT = jnp.pad(x.astype(jnp.float32).T, ((0, 0), (0, batch_pad - batch)))
    w1c = w1.astype(jnp.float32)
    w2c = w2.astype(jnp.float32)
    b1c = b1.reshape(HIDDEN_DIM, 1).astype(jnp.float32)
    b2c = b2.reshape(OUTPUT_DIM, 1).astype(jnp.float32)

    cost = pl.CostEstimate(
        flops=2 * batch_pad * (INPUT_DIM * HIDDEN_DIM
                               + HIDDEN_DIM * OUTPUT_DIM),
        transcendentals=0,
        bytes_accessed=4 * (batch_pad * (INPUT_DIM + OUTPUT_DIM)
                            + INPUT_DIM * HIDDEN_DIM + HIDDEN_DIM
                            + HIDDEN_DIM * OUTPUT_DIM + OUTPUT_DIM),
    )

    outT = pl.pallas_call(
        dqn_kernel,
        out_shape=jax.ShapeDtypeStruct((OUTPUT_DIM, batch_pad), jnp.float32),
        grid_spec=pltpu.PrefetchScalarGridSpec(
            num_scalar_prefetch=0,
            grid=(num_tiles,),
            in_specs=[
                pl.BlockSpec((INPUT_DIM, tb), lambda i: (0, i)),
                pl.BlockSpec((HIDDEN_DIM, INPUT_DIM), lambda i: (0, 0)),
                pl.BlockSpec((HIDDEN_DIM, 1), lambda i: (0, 0)),
                pl.BlockSpec((OUTPUT_DIM, HIDDEN_DIM), lambda i: (0, 0)),
                pl.BlockSpec((OUTPUT_DIM, 1), lambda i: (0, 0)),
            ],
            out_specs=pl.BlockSpec((OUTPUT_DIM, tb), lambda i: (0, i)),
        ),
        compiler_params=pltpu.CompilerParams(
            # Batch axis is independent across tiles; on v7x consider
            # pltpu.CORE_PARALLEL once num_tiles >= 2 (kept portable here).
            dimension_semantics=("parallel",),
            allow_input_fusion=[True, False, False, False, False],
        ),
        cost_estimate=cost,
    )(xT, w1c, b1c, w2c, b2c)

    return outT[:, :batch]                      # (4, B), padding dropped


def dqn_forward(x, w1, b1, w2, b2):
    """PyTorch-compatible forward: x (B, 2) -> Q-values (B, 4)."""
    return dqn_forward_qT(x, w1, b1, w2, b2).T


def init_params(key):
    """PyTorch nn.Linear default init: U(-1/sqrt(fan_in), 1/sqrt(fan_in)),
    weight layout (out_features, in_features)."""
    k1, k2, k3, k4 = jax.random.split(key, 4)
    bound1 = 1.0 / jnp.sqrt(INPUT_DIM)
    bound2 = 1.0 / jnp.sqrt(HIDDEN_DIM)
    w1 = jax.random.uniform(k1, (HIDDEN_DIM, INPUT_DIM), jnp.float32,
                            -bound1, bound1)
    b1 = jax.random.uniform(k2, (HIDDEN_DIM,), jnp.float32, -bound1, bound1)
    w2 = jax.random.uniform(k3, (OUTPUT_DIM, HIDDEN_DIM), jnp.float32,
                            -bound2, bound2)
    b2 = jax.random.uniform(k4, (OUTPUT_DIM,), jnp.float32, -bound2, bound2)
    return w1, b1, w2, b2


def reference_forward(x, w1, b1, w2, b2):
    h = jnp.maximum(x @ w1.T + b1, 0.0)
    return h @ w2.T + b2


if __name__ == "__main__":
    key = jax.random.PRNGKey(0)
    key_x, key_p = jax.random.split(key)

    batch = 8
    # gridworld state is (row, col) -> input_dim = 2
    x = jax.random.uniform(key_x, (batch, INPUT_DIM), jnp.float32, 0.0, 5.0)
    w1, b1, w2, b2 = init_params(key_p)

    fwd = jax.jit(dqn_forward)
    out = jax.block_until_ready(fwd(x, w1, b1, w2, b2))

    ref = reference_forward(x, w1, b1, w2, b2)
    assert out.shape == (batch, OUTPUT_DIM)
    assert jnp.allclose(out, ref, atol=1e-5, rtol=1e-5)

    print("KERNEL_OK")
</pallas_src>

<mosaic_0001>
module attributes {stable_mosaic.version = 11 : i64} {
  func.func @dqn_kernel(%arg0: i32, %arg1: memref<2x128xf32, #tpu.memory_space<vmem>>, %arg2: memref<64x2xf32, #tpu.memory_space<vmem>>, %arg3: memref<64x1xf32, #tpu.memory_space<vmem>>, %arg4: memref<4x64xf32, #tpu.memory_space<vmem>>, %arg5: memref<4x1xf32, #tpu.memory_space<vmem>>, %arg6: memref<4x128xf32, #tpu.memory_space<vmem>>) attributes {dimension_semantics = [#tpu.dimension_semantics<parallel>], iteration_bounds = array<i64: 1>, scalar_prefetch = 0 : i64, scratch_operands = 0 : i64, tpu.core_type = #tpu.core_type<tc>, window_params = [{transform_indices = @transform_0, window_bounds = array<i64: 2, 128>}, {pipeline_mode = #tpu.pipeline_mode<synchronous>, transform_indices = @transform_1, window_bounds = array<i64: 64, 2>}, {pipeline_mode = #tpu.pipeline_mode<synchronous>, transform_indices = @transform_2, window_bounds = array<i64: 64, 1>}, {pipeline_mode = #tpu.pipeline_mode<synchronous>, transform_indices = @transform_3, window_bounds = array<i64: 4, 64>}, {pipeline_mode = #tpu.pipeline_mode<synchronous>, transform_indices = @transform_4, window_bounds = array<i64: 4, 1>}, {transform_indices = @transform_5, window_bounds = array<i64: 4, 128>}]} {
    %c0 = arith.constant 0 : index
    %c0_0 = arith.constant 0 : index
    %0 = vector.load %arg1[%c0, %c0_0] : memref<2x128xf32, #tpu.memory_space<vmem>>, vector<2x128xf32>
    %c0_1 = arith.constant 0 : index
    %c0_2 = arith.constant 0 : index
    %1 = vector.load %arg2[%c0_1, %c0_2] : memref<64x2xf32, #tpu.memory_space<vmem>>, vector<64x2xf32>
    %c0_3 = arith.constant 0 : index
    %c0_4 = arith.constant 0 : index
    %2 = vector.load %arg3[%c0_3, %c0_4] : memref<64x1xf32, #tpu.memory_space<vmem>>, vector<64x1xf32>
    %c0_5 = arith.constant 0 : index
    %c0_6 = arith.constant 0 : index
    %3 = vector.load %arg4[%c0_5, %c0_6] : memref<4x64xf32, #tpu.memory_space<vmem>>, vector<4x64xf32>
    %c0_7 = arith.constant 0 : index
    %c0_8 = arith.constant 0 : index
    %4 = vector.load %arg5[%c0_7, %c0_8] : memref<4x1xf32, #tpu.memory_space<vmem>>, vector<4x1xf32>
    %5 = vector.extract_strided_slice %1 {offsets = [0, 0], sizes = [64, 1], strides = [1, 1]} : vector<64x2xf32> to vector<64x1xf32>
    %6 = vector.extract_strided_slice %0 {offsets = [0, 0], sizes = [1, 128], strides = [1, 1]} : vector<2x128xf32> to vector<1x128xf32>
    %7 = vector.broadcast %5 : vector<64x1xf32> to vector<64x128xf32>
    %8 = vector.broadcast %6 : vector<1x128xf32> to vector<64x128xf32>
    %9 = arith.mulf %7, %8 : vector<64x128xf32>
    %10 = vector.extract_strided_slice %1 {offsets = [0, 1], sizes = [64, 1], strides = [1, 1]} : vector<64x2xf32> to vector<64x1xf32>
    %11 = vector.extract_strided_slice %0 {offsets = [1, 0], sizes = [1, 128], strides = [1, 1]} : vector<2x128xf32> to vector<1x128xf32>
    %12 = vector.broadcast %10 : vector<64x1xf32> to vector<64x128xf32>
    %13 = vector.broadcast %11 : vector<1x128xf32> to vector<64x128xf32>
    %14 = arith.mulf %12, %13 : vector<64x128xf32>
    %15 = arith.addf %9, %14 : vector<64x128xf32>
    %16 = vector.broadcast %2 : vector<64x1xf32> to vector<64x128xf32>
    %17 = arith.addf %15, %16 : vector<64x128xf32>
    %cst = arith.constant 0.000000e+00 : f32
    %18 = vector.broadcast %cst : f32 to vector<64x128xf32>
    %19 = arith.maximumf %17, %18 : vector<64x128xf32>
    %cst_9 = arith.constant dense<0.000000e+00> : vector<4x128xf32>
    %20 = tpu.matmul %3, %19, %cst_9 {dimension_numbers = #tpu.dot_dimension_numbers<[1], [0], [0], [1], [0, 0, 1, 1], [], []>} : vector<4x64xf32>, vector<64x128xf32>, vector<4x128xf32> -> vector<4x128xf32>
    %21 = vector.broadcast %4 : vector<4x1xf32> to vector<4x128xf32>
    %22 = arith.addf %20, %21 : vector<4x128xf32>
    %c0_10 = arith.constant 0 : index
    %c0_11 = arith.constant 0 : index
    %23 = vector.load %arg6[%c0_10, %c0_11] : memref<4x128xf32, #tpu.memory_space<vmem>>, vector<4x128xf32>
    tpu.vector_store %arg6[%c0_10, %c0_11], %22 {strides = array<i32>} : memref<4x128xf32, #tpu.memory_space<vmem>>, vector<4x128xf32>,
    return
  }
  func.func @transform_0(%arg0: i32) -> (i32, i32) {
    %c0_i32 = arith.constant 0 : i32
    %c0_i32_0 = arith.constant 0 : i32
    return %c0_i32, %arg0 : i32, i32
  }
  func.func @transform_1(%arg0: i32) -> (i32, i32) {
    %c0_i32 = arith.constant 0 : i32
    %c0_i32_0 = arith.constant 0 : i32
    %c0_i32_1 = arith.constant 0 : i32
    return %c0_i32, %c0_i32_0 : i32, i32
  }
  func.func @transform_2(%arg0: i32) -> (i32, i32) {
    %c0_i32 = arith.constant 0 : i32
    %c0_i32_0 = arith.constant 0 : i32
    %c0_i32_1 = arith.constant 0 : i32
    return %c0_i32, %c0_i32_0 : i32, i32
  }
  func.func @transform_3(%arg0: i32) -> (i32, i32) {
    %c0_i32 = arith.constant 0 : i32
    %c0_i32_0 = arith.constant 0 : i32
    %c0_i32_1 = arith.constant 0 : i32
    return %c0_i32, %c0_i32_0 : i32, i32
  }
  func.func @transform_4(%arg0: i32) -> (i32, i32) {
    %c0_i32 = arith.constant 0 : i32
    %c0_i32_0 = arith.constant 0 : i32
    %c0_i32_1 = arith.constant 0 : i32
    return %c0_i32, %c0_i32_0 : i32, i32
  }
  func.func @transform_5(%arg0: i32) -> (i32, i32) {
    %c0_i32 = arith.constant 0 : i32
    %c0_i32_0 = arith.constant 0 : i32
    return %c0_i32, %arg0 : i32, i32
  }
}

</mosaic_0001>

<bundles_post_ra>
// kernel: dqn_forward.2
= control target key start
LH: loop header
LB: loop body
LE: loop exit
PB: predicated region body
PF: predicated region fallthrough
CT: control target
= control target key end

     0   :  { %s466_s0 = inlined_call_operand.vmem [shape: f32[64,2], index: 0, kind: input, shape index: {}]   ;;  %s467_s1 = inlined_call_operand.vmem [shape: f32[64,1], index: 1, kind: input, shape index: {}]   ;;  %s468_s2 = inlined_call_operand.vmem [shape: f32[4,64], index: 2, kind: input, shape index: {}]   ;;  %s469_s3 = inlined_call_operand.vmem [shape: f32[4,1], index: 3, kind: input, shape index: {}]   ;;  %s470_s4 = inlined_call_operand.vmem [shape: f32[2,8], index: 4, kind: input, shape index: {}]   ;;  %s471_s5 = inlined_call_operand.<no memory space> [shape: f32[], index: 5, kind: input, shape index: {}]   ;;  %s472_s6 = inlined_call_operand.vmem [shape: f32[4,128], index: 6, kind: output, shape index: {}]  }
   0x1   :  { %v11_v0 = vstv %s471_s5 }
   0x2   :  { %v38_v1 = vld [vmem:[%s466_s0 + $0x10] sm:$0xff]  ;;  %v36_v2 = vld [vmem:[%s466_s0] sm:$0xff]  ;;  %v23_v3 = vlaneseq  ;;  %v354_v4 = vmov 1   ;;  %v37_v8 = vld [vmem:[%s466_s0 + $0x8] sm:$0xff]  ;;  %v355_v14 = vmov 0   ;;  %v356_v20 = vmov 0.0|0.0  }
   0x3   :  { %346 = vset.pattern.permute.xlu0 %v354_v4  ;;  %344 = vset.pattern.permute.xlu1 %v354_v4  ;;  %v40_v7 = vld [vmem:[%s466_s0 + $0x20] sm:$0xff]  ;;  %v42_v11 = vld [vmem:[%s466_s0 + $0x30] sm:$0xff]  ;;  %v39_v13 = vld [vmem:[%s466_s0 + $0x18] sm:$0xff]  ;;  %vm357_vm2 = vmmov 0   ;;  %v358_v27 = vmov 0.0   ;;  %vm219_vm3 = vcmask 523264  }
   0x4   :  { %115 = vperm.xlu0 %346, %v38_v1   ;;  %107 = vperm.xlu1 %344, %v36_v2   ;;  %v403_v5 = vshrl.u32 %v23_v3, 7  ;;  %v29_v6 = vand.u32 127, %v23_v3  ;;  %v22_v9 = vld [vmem:[%s470_s4] sm:$0x3]  ;;  %v45_v16 = vld [vmem:[%s467_s1 + $0x8] sm:$0xff]  ;;  %v47_v18 = vld [vmem:[%s467_s1 + $0x18] sm:$0xff] }
   0x5   :  { %v44_v15 = vld [vmem:[%s467_s1] sm:$0xff]  ;;  %v41_v17 = vld [vmem:[%s466_s0 + $0x28] sm:$0xff]  ;;  %327 = vmatprep.subr.bf16.mxu0 %v356_v20  ;;  %v46_v21 = vld [vmem:[%s467_s1 + $0x10] sm:$0xff]  ;;  %324 = vmatprep.mubr.msk.f32.mxu0 %vm357_vm2, %v358_v27 }
   0x6   :  { %vm26_vm0 = vcmp.lt.s32.totalorder %v403_v5, 2  ;;  %vm31_vm1 = vcmp.lt.s32.totalorder %v29_v6, 8  ;;  %v49_v19 = vld [vmem:[%s467_s1 + $0x28] sm:$0xff]  ;;  %v53_v22 = vld [vmem:[%s469_s3] sm:$0xf]  ;;  %v43_v23 = vld [vmem:[%s466_s0 + $0x38] sm:$0xff] }
   0x7   :  { %v27_v10 = vsel %vm26_vm0, %v22_v9, %v11_v0  ;;  %v48_v24 = vld [vmem:[%s467_s1 + $0x20] sm:$0xff]  ;;  %v50_v25 = vld [vmem:[%s467_s1 + $0x30] sm:$0xff]  ;;  %v51_v26 = vld [vmem:[%s467_s1 + $0x38] sm:$0xff]  ;;  %v140_v34 = vsub.s32 1, %v403_v5  ;;  %v96_v35 = vsub.s32 0, %v403_v5 }
   0x8   :  { %123 = vperm.xlu0 %346, %v40_v7   ;;  %111 = vperm.xlu1 %344, %v37_v8   ;;  %v32_v12 = vsel %vm31_vm1, %v27_v10, %v11_v0 }
   0x9   :  { %34 = vst [vmem:[#allocation7] sm:$0x3] %v32_v12 }
   0xc   :  { %131 = vperm.xlu0 %346, %v42_v11   ;;  %345 = vset.pattern.permute.xlu1 %v355_v14 }
   0xd   :  { %71 = vperm.xlu1 %345, %v39_v13  }
  0x10   :  { %351 = vset.pattern.permute.xlu0 %v355_v14  ;;  %v35_v36 = vld [vmem:[#allocation7] sm:$0x3] }
  0x11   :  { %56 = vperm.xlu0 %351, %v36_v2   ;;  %347 = vset.pattern.permute.xlu1 %v354_v4  ;;  %v141_v39 = vrot.slane %v35_v36, %v140_v34  ;;  %v97_v40 = vrot.slane %v35_v36, %v96_v35 }
  0x12   :  { %119 = vperm.xlu1 %347, %v39_v13  }
  0x15   :  { %61 = vperm.xlu0 %351, %v37_v8  }
  0x16   :  { %348 = vset.pattern.permute.xlu1 %v355_v14 }
  0x17   :  { %160 = vperm.xlu1 %348, %v44_v15  }
  0x19   :  { %66 = vperm.xlu0 %351, %v38_v1  }
  0x1b   :  { %76 = vperm.xlu1 %348, %v40_v7  }
  0x1d   :  { %165 = vperm.xlu0 %351, %v45_v16  }
  0x1f   :  { %81 = vperm.xlu1 %348, %v41_v17  }
  0x21   :  { %175 = vperm.xlu0 %351, %v47_v18  }
  0x23   :  { %349 = vset.pattern.permute.xlu1 %v354_v4 }
  0x24   :  { %127 = vperm.xlu1 %349, %v41_v17  }
  0x25   :  { %185 = vperm.xlu0 %351, %v49_v19  }
  0x28   :  { %350 = vset.pattern.permute.xlu1 %v355_v14 }
  0x29   :  { %170 = vperm.xlu1 %350, %v46_v21   ;;  %216 = vperm.xlu0 %351, %v53_v22  }
  0x2d   :  { %86 = vperm.xlu1 %350, %v42_v11  }
  0x31   :  { %91 = vperm.xlu1 %350, %v43_v23  }
  0x35   :  { %352 = vset.pattern.permute.xlu1 %v354_v4 }
  0x36   :  { %135 = vperm.xlu1 %352, %v43_v23  }
  0x3a   :  { %353 = vset.pattern.permute.xlu1 %v355_v14 }
  0x3b   :  { %180 = vperm.xlu1 %353, %v48_v24  }
  0x3f   :  { %190 = vperm.xlu1 %353, %v50_v25  }
  0x43   :  { %195 = vperm.xlu1 %353, %v51_v26  }
  0x83   :  { %v108_v28 = vpop.permute.xlu1 %107  ;;  %v116_v29 = vpop.permute.xlu0 %115 }
  0x84   :  { %v142_v44 = vmul.f32 %v141_v39, %v108_v28  ;;  %v144_v59 = vmul.f32 %v141_v39, %v116_v29 }
  0x87   :  { %v112_v30 = vpop.permute.xlu1 %111  ;;  %v124_v31 = vpop.permute.xlu0 %123 }
  0x88   :  { %v143_v47 = vmul.f32 %v141_v39, %v112_v30  ;;  %v146_v12 = vmul.f32 %v141_v39, %v124_v31 }
  0x8b   :  { %v132_v32 = vpop.permute.xlu0 %131 }
  0x8c   :  { %v72_v33 = vpop.permute.xlu1 %71  ;;  %v148_v23 = vmul.f32 %v141_v39, %v132_v32  ;;  %v52_v32 = vld [vmem:[%s468_s2] sm:$0xf] }
  0x8d   :  { %v101_v60 = vmul.f32 %v97_v40, %v72_v33 }
  0x90   :  { %v57_v37 = vpop.permute.xlu0 %56 }
  0x91   :  { %v120_v38 = vpop.permute.xlu1 %119  ;;  %v98_v42 = vmul.f32 %v97_v40, %v57_v37 }
  0x92   :  { %v145_v57 = vmul.f32 %v141_v39, %v120_v38 }
  0x93   :  { %v150_v48 = vadd.f32 %v142_v44, %v98_v42 }
  0x94   :  { %v62_v41 = vpop.permute.xlu0 %61  ;;  %v153_v0 = vadd.f32 %v145_v57, %v101_v60 }
  0x95   :  { %v99_v45 = vmul.f32 %v97_v40, %v62_v41 }
  0x96   :  { %v161_v43 = vpop.permute.xlu1 %160 }
  0x97   :  { %v198_v50 = vadd.f32 %v161_v43, %v150_v48  ;;  %v151_v51 = vadd.f32 %v143_v47, %v99_v45 }
  0x98   :  { %v67_v46 = vpop.permute.xlu0 %66 }
  0x99   :  { %v206_v55 = vmax.f32 %v198_v50, 0.0  ;;  %v100_v61 = vmul.f32 %v97_v40, %v67_v46 }
  0x9a   :  { %v77_v49 = vpop.permute.xlu1 %76 }
  0x9b   :  { %v152_v2 = vadd.f32 %v144_v59, %v100_v61  ;;  %v102_v13 = vmul.f32 %v97_v40, %v77_v49 }
  0x9c   :  { %v166_v52 = vpop.permute.xlu0 %165 }
  0x9d   :  { %v199_v53 = vadd.f32 %v166_v52, %v151_v51  ;;  %v154_v18 = vadd.f32 %v146_v12, %v102_v13 }
  0x9e   :  { %v82_v54 = vpop.permute.xlu1 %81 }
  0x9f   :  { %v207_v56 = vmax.f32 %v199_v53, 0.0  ;;  %v103_v11 = vmul.f32 %v97_v40, %v82_v54 }
  0xa0   :  { %v176_v63 = vpop.permute.xlu0 %175 }
  0xa1   :  { %v328_v58 = vpack.c.bf16 %v207_v56, %v206_v55  ;;  %v201_v1 = vadd.f32 %v176_v63, %v153_v0 }
  0xa3   :  { %v128_v62 = vpop.permute.xlu1 %127  ;;  %329 = vmatpush3.bf16.msra.mxu0 %v328_v58  ;;  %v209_v5 = vmax.f32 %v201_v1, 0.0 }
  0xa4   :  { %330 = vmatprep.subr.bf16.mxu0 %v356_v20  ;;  %v147_v10 = vmul.f32 %v141_v39, %v128_v62  ;;  %v186_v16 = vpop.permute.xlu0 %185 }
  0xa6   :  { %v155_v14 = vadd.f32 %v147_v10, %v103_v11 }
  0xa8   :  { %v171_v3 = vpop.permute.xlu1 %170  ;;  %v203_v17 = vadd.f32 %v186_v16, %v155_v14 }
  0xa9   :  { %v200_v4 = vadd.f32 %v171_v3, %v152_v2 }
  0xaa   :  { %v211_v24 = vmax.f32 %v203_v17, 0.0 }
  0xab   :  { %v208_v6 = vmax.f32 %v200_v4, 0.0 }
  0xac   :  { %v87_v7 = vpop.permute.xlu1 %86 }
  0xad   :  { %v331_v8 = vpack.c.bf16 %v209_v5, %v208_v6  ;;  %v104_v21 = vmul.f32 %v97_v40, %v87_v7 }
  0xaf   :  { %332 = vmatpush3.bf16.msra.mxu0 %v331_v8  ;;  %v156_v30 = vadd.f32 %v148_v23, %v104_v21 }
  0xb0   :  { %v92_v9 = vpop.permute.xlu1 %91  ;;  %333 = vmatprep.subr.bf16.mxu0 %v356_v20 }
  0xb1   :  { %v105_v28 = vmul.f32 %v97_v40, %v92_v9 }
  0xb5   :  { %v136_v15 = vpop.permute.xlu1 %135 }
  0xb6   :  { %v149_v25 = vmul.f32 %v141_v39, %v136_v15  ;;  %v217_v39 = vpop.permute.xlu0 %216 }
  0xb8   :  { %v157_v31 = vadd.f32 %v149_v25, %v105_v28 }
  0xba   :  { %v181_v19 = vpop.permute.xlu1 %180 }
  0xbb   :  { %v202_v22 = vadd.f32 %v181_v19, %v154_v18 }
  0xbd   :  { %v210_v26 = vmax.f32 %v202_v22, 0.0 }
  0xbe   :  { %v191_v27 = vpop.permute.xlu1 %190 }
  0xbf   :  { %v334_v29 = vpack.c.bf16 %v211_v24, %v210_v26  ;;  %v204_v33 = vadd.f32 %v191_v27, %v156_v30 }
  0xc1   :  { %335 = vmatpush3.bf16.msra.mxu0 %v334_v29  ;;  %v212_v36 = vmax.f32 %v204_v33, 0.0 }
  0xc2   :  { %v196_v34 = vpop.permute.xlu1 %195  ;;  %336 = vmatprep.subr.bf16.mxu0 %v356_v20 }
  0xc3   :  { %v205_v35 = vadd.f32 %v196_v34, %v157_v31 }
  0xc5   :  { %v213_v37 = vmax.f32 %v205_v35, 0.0 }
  0xc7   :  { %v337_v38 = vpack.c.bf16 %v213_v37, %v212_v36 }
  0xc9   :  { %338 = vmatpush3.bf16.msra.mxu0 %v337_v38 }
  0xcc   :  { %325 = vmatmul.mubr.msk.f32.vlgmr.msra.gmra.mrb[0].mxu0 %vm219_vm3, %v52_v32 }
 0x19f   :  { %v289_v40 = vpop.f32.mrb[0].mxu0 }
 0x1a0   :  { %v290_v41 = vadd.f32 %v289_v40, %v217_v39  ;;  %v326_v42 = vpop.f32.mrb[1].mxu0 }
 0x1a2   :  { %293 = vst [vmem:[%s472_s6] sm:$0xf] %v290_v41 }

</bundles_post_ra>
